<compile_context>
chip_gen: v6e
topology: v6e:2x2x1
jax: 0.10.0
libtpu: 0.0.40
codegen_flags: <defaults>
</compile_context>

<pallas_src>
import functools
import math

import jax
import jax.numpy as jnp
import numpy as np
from jax.experimental import pallas as pl
from jax.experimental.pallas import tpu as pltpu

BN_EPS = 1e-5
# TODO(synk): `win_size` is a module-level global in the original training
# script; here it is passed explicitly (main() ties it to seq_len).
WIN_SIZE = 8.0

_LANES = 128       # slab lane width (one lane tile)
_BF16_ROWS = 16    # bf16 sublane packing: weight-slab entries aligned to 16 rows


# ----------------------------- fused Pallas kernel --------------------------

def _fused_cnf_kernel(x_ref, p_ref, w_ref, v_ref, o_ref, *, lay, n_rows,
                      inv_win, eps):
    """Entire RNNcNF forward (conditioning net + RealNVP + loss) in one kernel.

    x_ref : (N, cond_dim) f32   raw condition (batch*seq rows)
    p_ref : (N, u_dim)    f32   flow variable
    w_ref : (Rw, 128)     bf16  all matmul weights (host-packed slab)
    v_ref : (Rv, 128)     f32   all biases / BN vectors (one row each)
    o_ref : (1, 1)        f32   scalar loss
    """
    u = lay["u_dim"]
    H = lay["hidden"]
    H2 = 2 * H
    nb = lay["n_blocks"]
    nh = lay["n_hidden"]
    n = x_ref.shape[0]

    def mm(a, entry):
        """bf16 MXU matmul of an f32 activation against a weight-slab entry."""
        r0, din, dout = entry
        wm = w_ref[r0:r0 + din, 0:dout]                 # static ref slice
        return jnp.dot(a.astype(jnp.bfloat16), wm,
                       preferred_element_type=jnp.float32)

    def vec(entry):
        r0, d = entry
        return v_ref[r0:r0 + 1, 0:d]                    # (1, d) f32 row

    x = x_ref[...]
    z = p_ref[...]

    # ---- conditioning network: l1 -> BatchNorm1d (biased var) -> ELU -> l2 --
    h = mm(x, lay["l1_w"]) + vec(lay["l1_b"])
    m = jnp.mean(h, axis=0, keepdims=True)
    hc = h - m
    var = jnp.mean(hc * hc, axis=0, keepdims=True)      # two-pass, biased
    h = vec(lay["bn2_g"]) * (hc * jax.lax.rsqrt(var + eps)) + vec(lay["bn2_b"])
    # ELU: exp only evaluated on the clamped negative part (overflow safe).
    h = jnp.where(h > 0.0, h, jnp.exp(jnp.minimum(h, 0.0)) - 1.0)
    x_en = mm(h, lay["l2_w"]) + vec(lay["l2_b"])

    # ---- loop-invariant work hoisted out of the block loop ------------------
    # conditioning projection of ALL blocks in one matmul (n_blocks*2H lanes)
    xw0_all = mm(x_en, lay["w0c_all"])                  # (N, nb*2H)
    # lane selectors shared by every block / hidden layer
    is_s = jax.lax.broadcasted_iota(jnp.int32, (n, H2), 1) < H
    lane_par = jax.lax.broadcasted_iota(jnp.int32, (n, u), 1) & 1

    # ---- RealNVP: n_blocks x (masked affine coupling + flow BatchNorm) -----
    jac = jnp.zeros_like(z)
    unbias = n_rows / (n_rows - 1.0)

    for k in range(nb):
        blk = lay["blocks"][k]
        # alternating binary mask known at trace time; it is already folded
        # into w0u host-side, so only a where-select is needed here.
        mask_b = lane_par == ((k + 1) % 2)              # True where z passes through

        st = (xw0_all[:, k * H2:(k + 1) * H2]
              + mm(z, blk["w0u"]) + vec(blk["b0"]))

        # Lanes [0, H) carry the s-net (tanh), lanes [H, 2H) the t-net (relu).
        for j in range(nh):                             # block_diag(Ws, Wt) layers
            act = jnp.where(is_s, jnp.tanh(st), jnp.maximum(st, 0.0))
            st = mm(act, blk["wh"][j]) + vec(blk["bh"][j])
        act = jnp.where(is_s, jnp.tanh(st), jnp.maximum(st, 0.0))

        # fused block-diag head: one matmul -> [s | t]
        head = mm(act, blk["whead"]) + vec(blk["bhead"])   # (N, 2u)
        s = head[:, 0:u]
        t = head[:, u:2 * u]

        # masked affine coupling: z = mask*z + (1-mask)*(z - t)*exp(-s)
        z = jnp.where(mask_b, z, (z - t) * jnp.exp(-s))
        jac = jac - jnp.where(mask_b, 0.0, s)

        # flow BatchNorm (training mode, unbiased batch variance);
        # gamma = exp(log_gamma) precomputed host-side.
        m = jnp.mean(z, axis=0, keepdims=True)
        zc = z - m
        bv = jnp.mean(zc * zc, axis=0, keepdims=True) * unbias
        z = vec(blk["gamma"]) * (zc * jax.lax.rsqrt(bv + eps)) + vec(blk["beta"])
        jac = jac + (vec(blk["log_gamma"]) - 0.5 * jnp.log(bv + eps))

    # ---- cNF loss: mean_n sum_d ((0.5 z^2 - jac) / win_size) ---------------
    per = 0.5 * z * z - jac
    tot = jnp.sum(jnp.sum(per, axis=1, keepdims=True), axis=0, keepdims=True)
    o_ref[...] = tot * (inv_win / n_rows)


# ------------------------- host-side parameter packing ----------------------

def pack_params(params):
    """Coalesce all parameters into two host-packed slabs + a static layout.

      * bf16 weight slab (entries at 16-row-aligned offsets, lanes zero-padded
        to 128): every matmul weight.  The s/t nets of each coupling block are
        fused lane-wise: layer 0 = [Ws0|Wt0] split into cond rows (stacked for
        ALL blocks into one W0c_all) and u rows (with the binary mask folded
        in); hidden layers = block_diag(Ws, Wt); head = block-diag [s|t].
      * f32 vector slab: one 128-lane row per bias / BN vector;
        gamma = exp(bn_log_gamma) precomputed.

    Returns (weight_slab bf16, vector_slab f32, static layout dict).
    """
    flow = params["flow"]
    n_blocks = len(flow)
    n_hidden = len(flow[0]["s"]) - 2
    hidden = flow[0]["s"][0][0].shape[1]
    u_dim = flow[0]["mask"].shape[1]
    summary_dim = params["l2"][0].shape[1]
    H2 = 2 * hidden
    # TODO(synk): chunk w0c_all into <=128-lane groups when n_blocks*2H > 128.
    assert n_blocks * H2 <= _LANES, "fused conditioning projection must fit 128 lanes"

    w_tiles, v_rows = [], []
    w_cursor = 0

    def add_w(a):
        nonlocal w_cursor
        a = jnp.asarray(a, jnp.float32)
        din, dout = a.shape
        assert dout <= _LANES
        rpad = (-din) % _BF16_ROWS
        w_tiles.append(jnp.pad(a, ((0, rpad), (0, _LANES - dout))).astype(jnp.bfloat16))
        entry = (w_cursor, din, dout)
        w_cursor += din + rpad
        return entry

    def add_v(a):
        a = jnp.asarray(a, jnp.float32).reshape(1, -1)
        d = a.shape[1]
        assert d <= _LANES
        v_rows.append(jnp.pad(a, ((0, 0), (0, _LANES - d))))
        return (len(v_rows) - 1, d)

    lay = dict(n_blocks=n_blocks, n_hidden=n_hidden, hidden=hidden,
               u_dim=u_dim, summary_dim=summary_dim)
    lay["l1_w"] = add_w(params["l1"][0])
    lay["l1_b"] = add_v(params["l1"][1])
    lay["bn2_g"] = add_v(params["bn2_gamma"])
    lay["bn2_b"] = add_v(params["bn2_beta"])
    lay["l2_w"] = add_w(params["l2"][0])
    lay["l2_b"] = add_v(params["l2"][1])

    w0c_cols, blocks = [], []
    z_hh = jnp.zeros((hidden, hidden), jnp.float32)
    z_hu = jnp.zeros((hidden, u_dim), jnp.float32)
    for k, blk in enumerate(flow):
        # The kernel rebuilds the mask from lane parity; check the params agree.
        mask_np = np.asarray(blk["mask"]).reshape(-1)
        assert np.array_equal(mask_np.astype(np.int64), (np.arange(u_dim) + k) % 2), \
            "TODO(synk): non-alternating masks would need an explicit mask input"

        (ws0, bs0), (wt0, bt0) = blk["s"][0], blk["t"][0]
        w0 = jnp.concatenate([ws0, wt0], axis=1)                  # (summary+u, 2H)
        w0c_cols.append(w0[:summary_dim])                         # cond rows (hoisted)
        w0u_masked = w0[summary_dim:] * blk["mask"].reshape(u_dim, 1)   # fold mask

        b = {"w0u": add_w(w0u_masked),
             "b0": add_v(jnp.concatenate([bs0, bt0], axis=1)),
             "wh": [], "bh": []}
        for (wsh, bsh), (wth, bth) in zip(blk["s"][1:-1], blk["t"][1:-1]):
            wh = jnp.concatenate([jnp.concatenate([wsh, z_hh], axis=1),
                                  jnp.concatenate([z_hh, wth], axis=1)], axis=0)
            b["wh"].append(add_w(wh))
            b["bh"].append(add_v(jnp.concatenate([bsh, bth], axis=1)))
        (wsl, bsl), (wtl, btl) = blk["s"][-1], blk["t"][-1]
        whead = jnp.concatenate([jnp.concatenate([wsl, z_hu], axis=1),
                                 jnp.concatenate([z_hu, wtl], axis=1)], axis=0)
        b["whead"] = add_w(whead)
        b["bhead"] = add_v(jnp.concatenate([bsl, btl], axis=1))
        b["gamma"] = add_v(jnp.exp(blk["bn_log_gamma"]))          # exp hoisted to host
        b["log_gamma"] = add_v(blk["bn_log_gamma"])
        b["beta"] = add_v(blk["bn_beta"])
        blocks.append(b)

    lay["w0c_all"] = add_w(jnp.concatenate(w0c_cols, axis=1))     # (summary, nb*2H)
    lay["blocks"] = blocks

    wts = jnp.concatenate(w_tiles, axis=0)                        # (Rw, 128) bf16
    vecs = jnp.concatenate(v_rows, axis=0)                        # (Rv, 128) f32
    vpad = (-vecs.shape[0]) % 8
    if vpad:
        vecs = jnp.pad(vecs, ((0, vpad), (0, 0)))
    return wts, vecs, lay


# ------------------------------ model forward --------------------------------

def rnn_cnf_forward(wts, vecs, x, p, *, lay, win_size=WIN_SIZE):
    x2 = x.reshape(-1, x.shape[-1]).astype(jnp.float32)
    p2 = p.reshape(-1, p.shape[-1]).astype(jnp.float32)
    n_rows = x2.shape[0]
    assert n_rows > 1, "batch statistics need batch*seq > 1"

    kernel = functools.partial(
        _fused_cnf_kernel, lay=lay, n_rows=float(n_rows),
        inv_win=1.0 / float(win_size), eps=BN_EPS)

    out = pl.pallas_call(
        kernel,
        in_specs=[pl.BlockSpec(memory_space=pltpu.MemorySpace.VMEM)] * 4,
        out_specs=pl.BlockSpec(memory_space=pltpu.MemorySpace.VMEM),
        out_shape=jax.ShapeDtypeStruct((1, 1), jnp.float32),
    )(x2, p2, wts, vecs)
    return out[0, 0]


# ------------------------------ parameter init -------------------------------

def init_linear(key, d_in, d_out):
    """PyTorch nn.Linear default init: U(-1/sqrt(fan_in), 1/sqrt(fan_in))."""
    k1, k2 = jax.random.split(key)
    bound = 1.0 / math.sqrt(d_in)
    w = jax.random.uniform(k1, (d_in, d_out), jnp.float32, -bound, bound)
    b = jax.random.uniform(k2, (1, d_out), jnp.float32, -bound, bound)
    return w, b


def init_params(key, cfg):
    u_dim = cfg["u_dim"]
    cond_dim = cfg["cond_dim"]
    summary_dim = cfg["summary_dim"]
    h_lin = cfg["h_linear_dim"]
    hidden = cfg["hidden_layer_size"]
    n_hidden = cfg["n_hidden"]
    n_blocks = cfg["n_blocks"]

    keys = jax.random.split(key, 2 + 2 * n_blocks * (n_hidden + 2))
    ki = iter(keys)

    params = {
        "l1": init_linear(next(ki), cond_dim, h_lin),
        "bn2_gamma": jnp.ones((1, h_lin), jnp.float32),
        "bn2_beta": jnp.zeros((1, h_lin), jnp.float32),
        "l2": init_linear(next(ki), h_lin, summary_dim),
    }

    # RealNVP: alternating binary mask per coupling block, each block followed
    # by a flow BatchNorm (log_gamma/beta init to zero, as in the reference).
    mask = (jnp.arange(u_dim) % 2).astype(jnp.float32).reshape(1, u_dim)
    blocks = []
    for _ in range(n_blocks):
        in_dim = u_dim + summary_dim  # condition is concatenated: [y, masked_x]
        s_layers = [init_linear(next(ki), in_dim, hidden)]
        t_layers = [init_linear(next(ki), in_dim, hidden)]
        for _ in range(n_hidden):
            s_layers.append(init_linear(next(ki), hidden, hidden))
            t_layers.append(init_linear(next(ki), hidden, hidden))
        s_layers.append(init_linear(next(ki), hidden, u_dim))
        t_layers.append(init_linear(next(ki), hidden, u_dim))
        blocks.append(
            {
                "mask": mask,
                "s": s_layers,  # Tanh between linears
                "t": t_layers,  # ReLU between linears
                "bn_log_gamma": jnp.zeros((1, u_dim), jnp.float32),
                "bn_beta": jnp.zeros((1, u_dim), jnp.float32),
            }
        )
        mask = 1.0 - mask
    params["flow"] = blocks
    return params


# --------------------------- pure-JAX reference ------------------------------

def reference_forward(params, x, p, win_size):
    """Plain-JAX mirror of the PyTorch forward (training mode), for checking."""
    dot = functools.partial(jnp.dot, precision=jax.lax.Precision.HIGHEST)
    x2 = x.reshape(-1, x.shape[-1])
    p2 = p.reshape(-1, p.shape[-1])
    n = x2.shape[0]

    h = dot(x2, params["l1"][0]) + params["l1"][1]
    m = h.mean(0, keepdims=True)
    v = ((h - m) ** 2).mean(0, keepdims=True)
    h = params["bn2_gamma"] * (h - m) / jnp.sqrt(v + BN_EPS) + params["bn2_beta"]
    h = jnp.where(h > 0, h, jnp.expm1(jnp.minimum(h, 0.0)))
    x_en = dot(h, params["l2"][0]) + params["l2"][1]

    z, jac = p2, jnp.zeros_like(p2)
    for blk in params["flow"]:
        mask = blk["mask"]
        inp = jnp.concatenate([x_en, z * mask], axis=1)
        s = dot(inp, blk["s"][0][0]) + blk["s"][0][1]
        for w, b in blk["s"][1:]:
            s = dot(jnp.tanh(s), w) + b
        t = dot(inp, blk["t"][0][0]) + blk["t"][0][1]
        for w, b in blk["t"][1:]:
            t = dot(jnp.maximum(t, 0.0), w) + b
        z = z * mask + (1.0 - mask) * (z - t) * jnp.exp(-s)
        jac = jac - (1.0 - mask) * s
        m = z.mean(0, keepdims=True)
        v = ((z - m) ** 2).mean(0, keepdims=True) * (n / (n - 1.0))
        z = jnp.exp(blk["bn_log_gamma"]) * (z - m) / jnp.sqrt(v + BN_EPS) + blk["bn_beta"]
        jac = jac + (blk["bn_log_gamma"] - 0.5 * jnp.log(v + BN_EPS))
    return jnp.mean(jnp.sum((0.5 * z * z - jac) / win_size, axis=1))


# ----------------------------------- main ------------------------------------

if __name__ == "__main__":
    cfg = dict(
        u_dim=4,            # dimension of p (flow variable)
        cond_dim=6,         # dimension of x (raw condition)
        summary_dim=8,      # conditioning-summary dimension fed to the cINN
        n_blocks=2,
        hidden_layer_size=32,
        n_hidden=1,
        h_rnn_dim=16,       # unused in forward (RNN path not exercised)
        h_linear_dim=16,
    )
    batch, seq_len = 2, 8
    win_size = float(seq_len)   # the training script's global `win_size`

    key = jax.random.PRNGKey(0)
    k_par, k_x, k_p = jax.random.split(key, 3)
    params = init_params(k_par, cfg)
    wts, vecs, lay = pack_params(params)

    x = jax.random.normal(k_x, (batch, seq_len, cfg["cond_dim"]), jnp.float32)
    p = jax.random.normal(k_p, (batch, seq_len, cfg["u_dim"]), jnp.float32)

    fwd = jax.jit(functools.partial(rnn_cnf_forward, lay=lay, win_size=win_size))
    loss = fwd(wts, vecs, x, p)
    jax.block_until_ready(loss)

    ref = reference_forward(params, x, p, win_size)
    assert loss.shape == () and bool(jnp.isfinite(loss))
    # tolerance accounts for bf16 MXU operands in the kernel vs. the f32 reference
    assert jnp.allclose(loss, ref, rtol=3e-2, atol=3e-2), (loss, ref)
    print("KERNEL_OK")
</pallas_src>

<mosaic_0001>
module attributes {stable_mosaic.version = 11 : i64} {
  func.func @_fused_cnf_kernel(%arg0: memref<16x6xf32, #tpu.memory_space<vmem>>, %arg1: memref<16x4xf32, #tpu.memory_space<vmem>>, %arg2: memref<336x128xbf16, #tpu.memory_space<vmem>>, %arg3: memref<16x128xf32, #tpu.memory_space<vmem>>, %arg4: memref<1x1xf32, #tpu.memory_space<vmem>>) attributes {dimension_semantics = [], scalar_prefetch = 0 : i64, scratch_operands = 0 : i64, tpu.core_type = #tpu.core_type<tc>} {
    %c0 = arith.constant 0 : index
    %c0_0 = arith.constant 0 : index
    %0 = vector.load %arg0[%c0, %c0_0] : memref<16x6xf32, #tpu.memory_space<vmem>>, vector<16x6xf32>
    %c0_1 = arith.constant 0 : index
    %c0_2 = arith.constant 0 : index
    %1 = vector.load %arg1[%c0_1, %c0_2] : memref<16x4xf32, #tpu.memory_space<vmem>>, vector<16x4xf32>
    %c0_3 = arith.constant 0 : index
    %c0_4 = arith.constant 0 : index
    %2 = vector.load %arg2[%c0_3, %c0_4] : memref<336x128xbf16, #tpu.memory_space<vmem>>, vector<6x16xbf16>
    %3 = arith.truncf %0 : vector<16x6xf32> to vector<16x6xbf16>
    %cst = arith.constant dense<0.000000e+00> : vector<16x16xf32>
    %4 = tpu.matmul %3, %2, %cst {dimension_numbers = #tpu.dot_dimension_numbers<[1], [0], [0], [1], [0, 0, 1, 1], [], []>} : vector<16x6xbf16>, vector<6x16xbf16>, vector<16x16xf32> -> vector<16x16xf32>
    %c0_5 = arith.constant 0 : index
    %c0_6 = arith.constant 0 : index
    %5 = vector.load %arg3[%c0_5, %c0_6] : memref<16x128xf32, #tpu.memory_space<vmem>>, vector<1x16xf32>
    %6 = vector.broadcast %5 : vector<1x16xf32> to vector<16x16xf32>
    %7 = arith.addf %4, %6 : vector<16x16xf32>
    %cst_7 = arith.constant dense<0.000000e+00> : vector<16xf32>
    %8 = vector.multi_reduction <add>, %7, %cst_7 [0] : vector<16x16xf32> to vector<16xf32>
    %9 = vector.shape_cast %8 : vector<16xf32> to vector<1x16xf32>
    %cst_8 = arith.constant 1.600000e+01 : f32
    %10 = vector.broadcast %cst_8 : f32 to vector<1x16xf32>
    %11 = arith.divf %9, %10 : vector<1x16xf32>
    %12 = vector.broadcast %11 : vector<1x16xf32> to vector<16x16xf32>
    %13 = arith.subf %7, %12 : vector<16x16xf32>
    %14 = arith.mulf %13, %13 : vector<16x16xf32>
    %cst_9 = arith.constant dense<0.000000e+00> : vector<16xf32>
    %15 = vector.multi_reduction <add>, %14, %cst_9 [0] : vector<16x16xf32> to vector<16xf32>
    %16 = vector.shape_cast %15 : vector<16xf32> to vector<1x16xf32>
    %cst_10 = arith.constant 1.600000e+01 : f32
    %17 = vector.broadcast %cst_10 : f32 to vector<1x16xf32>
    %18 = arith.divf %16, %17 : vector<1x16xf32>
    %c1 = arith.constant 1 : index
    %c0_11 = arith.constant 0 : index
    %19 = vector.load %arg3[%c1, %c0_11] : memref<16x128xf32, #tpu.memory_space<vmem>>, vector<1x16xf32>
    %cst_12 = arith.constant 9.99999974E-6 : f32
    %20 = vector.broadcast %cst_12 : f32 to vector<1x16xf32>
    %21 = arith.addf %18, %20 : vector<1x16xf32>
    %22 = math.rsqrt %21 : vector<1x16xf32>
    %23 = vector.broadcast %22 : vector<1x16xf32> to vector<16x16xf32>
    %24 = arith.mulf %13, %23 : vector<16x16xf32>
    %25 = vector.broadcast %19 : vector<1x16xf32> to vector<16x16xf32>
    %26 = arith.mulf %25, %24 : vector<16x16xf32>
    %c2 = arith.constant 2 : index
    %c0_13 = arith.constant 0 : index
    %27 = vector.load %arg3[%c2, %c0_13] : memref<16x128xf32, #tpu.memory_space<vmem>>, vector<1x16xf32>
    %28 = vector.broadcast %27 : vector<1x16xf32> to vector<16x16xf32>
    %29 = arith.addf %26, %28 : vector<16x16xf32>
    %cst_14 = arith.constant 0.000000e+00 : f32
    %30 = vector.broadcast %cst_14 : f32 to vector<16x16xf32>
    %31 = arith.cmpf ogt, %29, %30 : vector<16x16xf32>
    %cst_15 = arith.constant 0.000000e+00 : f32
    %32 = vector.broadcast %cst_15 : f32 to vector<16x16xf32>
    %33 = arith.minimumf %29, %32 : vector<16x16xf32>
    %34 = math.exp %33 : vector<16x16xf32>
    %cst_16 = arith.constant 1.000000e+00 : f32
    %35 = vector.broadcast %cst_16 : f32 to vector<16x16xf32>
    %36 = arith.subf %34, %35 : vector<16x16xf32>
    %37 = arith.select %31, %29, %36 : vector<16x16xi1>, vector<16x16xf32>
    %c16 = arith.constant 16 : index
    %c0_17 = arith.constant 0 : index
    %38 = vector.load %arg2[%c16, %c0_17] : memref<336x128xbf16, #tpu.memory_space<vmem>>, vector<16x8xbf16>
    %39 = arith.truncf %37 : vector<16x16xf32> to vector<16x16xbf16>
    %cst_18 = arith.constant dense<0.000000e+00> : vector<16x8xf32>
    %40 = tpu.matmul %39, %38, %cst_18 {dimension_numbers = #tpu.dot_dimension_numbers<[1], [0], [0], [1], [0, 0, 1, 1], [], []>} : vector<16x16xbf16>, vector<16x8xbf16>, vector<16x8xf32> -> vector<16x8xf32>
    %c3 = arith.constant 3 : index
    %c0_19 = arith.constant 0 : index
    %41 = vector.load %arg3[%c3, %c0_19] : memref<16x128xf32, #tpu.memory_space<vmem>>, vector<1x8xf32>
    %42 = vector.broadcast %41 : vector<1x8xf32> to vector<16x8xf32>
    %43 = arith.addf %40, %42 : vector<16x8xf32>
    %c320 = arith.constant 320 : index
    %c0_20 = arith.constant 0 : index
    %44 = vector.load %arg2[%c320, %c0_20] : memref<336x128xbf16, #tpu.memory_space<vmem>>, vector<8x128xbf16>
    %45 = arith.truncf %43 : vector<16x8xf32> to vector<16x8xbf16>
    %cst_21 = arith.constant dense<0.000000e+00> : vector<16x128xf32>
    %46 = tpu.matmul %45, %44, %cst_21 {dimension_numbers = #tpu.dot_dimension_numbers<[1], [0], [0], [1], [0, 0, 1, 1], [], []>} : vector<16x8xbf16>, vector<8x128xbf16>, vector<16x128xf32> -> vector<16x128xf32>
    %47 = tpu.iota {dimensions = array<i32: 1>} : vector<16x64xi32>
    %c32_i32 = arith.constant 32 : i32
    %48 = vector.broadcast %c32_i32 : i32 to vector<16x64xi32>
    %49 = arith.cmpi slt, %47, %48 : vector<16x64xi32>
    %50 = tpu.iota {dimensions = array<i32: 1>} : vector<16x4xi32>
    %c1_i32 = arith.constant 1 : i32
    %51 = vector.broadcast %c1_i32 : i32 to vector<16x4xi32>
    %52 = arith.andi %50, %51 : vector<16x4xi32>
    %cst_22 = arith.constant 0.000000e+00 : f32
    %53 = vector.broadcast %cst_22 : f32 to vector<16x4xf32>
    %c1_i32_23 = arith.constant 1 : i32
    %54 = vector.broadcast %c1_i32_23 : i32 to vector<16x4xi32>
    %55 = arith.cmpi eq, %52, %54 : vector<16x4xi32>
    %56 = vector.extract_strided_slice %46 {offsets = [0, 0], sizes = [16, 64], strides = [1, 1]} : vector<16x128xf32> to vector<16x64xf32>
    %c32 = arith.constant 32 : index
    %c0_24 = arith.constant 0 : index
    %57 = vector.load %arg2[%c32, %c0_24] : memref<336x128xbf16, #tpu.memory_space<vmem>>, vector<4x64xbf16>
    %58 = arith.truncf %1 : vector<16x4xf32> to vector<16x4xbf16>
    %cst_25 = arith.constant dense<0.000000e+00> : vector<16x64xf32>
    %59 = tpu.matmul %58, %57, %cst_25 {dimension_numbers = #tpu.dot_dimension_numbers<[1], [0], [0], [1], [0, 0, 1, 1], [], []>} : vector<16x4xbf16>, vector<4x64xbf16>, vector<16x64xf32> -> vector<16x64xf32>
    %60 = arith.addf %56, %59 : vector<16x64xf32>
    %c4 = arith.constant 4 : index
    %c0_26 = arith.constant 0 : index
    %61 = vector.load %arg3[%c4, %c0_26] : memref<16x128xf32, #tpu.memory_space<vmem>>, vector<1x64xf32>
    %62 = vector.broadcast %61 : vector<1x64xf32> to vector<16x64xf32>
    %63 = arith.addf %60, %62 : vector<16x64xf32>
    %64 = math.tanh %63 : vector<16x64xf32>
    %cst_27 = arith.constant 0.000000e+00 : f32
    %65 = vector.broadcast %cst_27 : f32 to vector<16x64xf32>
    %66 = arith.maximumf %63, %65 : vector<16x64xf32>
    %67 = arith.select %49, %64, %66 : vector<16x64xi1>, vector<16x64xf32>
    %c48 = arith.constant 48 : index
    %c0_28 = arith.constant 0 : index
    %68 = vector.load %arg2[%c48, %c0_28] : memref<336x128xbf16, #tpu.memory_space<vmem>>, vector<64x64xbf16>
    %69 = arith.truncf %67 : vector<16x64xf32> to vector<16x64xbf16>
    %cst_29 = arith.constant dense<0.000000e+00> : vector<16x64xf32>
    %70 = tpu.matmul %69, %68, %cst_29 {dimension_numbers = #tpu.dot_dimension_numbers<[1], [0], [0], [1], [0, 0, 1, 1], [], []>} : vector<16x64xbf16>, vector<64x64xbf16>, vector<16x64xf32> -> vector<16x64xf32>
    %c5 = arith.constant 5 : index
    %c0_30 = arith.constant 0 : index
    %71 = vector.load %arg3[%c5, %c0_30] : memref<16x128xf32, #tpu.memory_space<vmem>>, vector<1x64xf32>
    %72 = vector.broadcast %71 : vector<1x64xf32> to vector<16x64xf32>
    %73 = arith.addf %70, %72 : vector<16x64xf32>
    %74 = math.tanh %73 : vector<16x64xf32>
    %cst_31 = arith.constant 0.000000e+00 : f32
    %75 = vector.broadcast %cst_31 : f32 to vector<16x64xf32>
    %76 = arith.maximumf %73, %75 : vector<16x64xf32>
    %77 = arith.select %49, %74, %76 : vector<16x64xi1>, vector<16x64xf32>
    %c112 = arith.constant 112 : index
    %c0_32 = arith.constant 0 : index
    %78 = vector.load %arg2[%c112, %c0_32] : memref<336x128xbf16, #tpu.memory_space<vmem>>, vector<64x8xbf16>
    %79 = arith.truncf %77 : vector<16x64xf32> to vector<16x64xbf16>
    %cst_33 = arith.constant dense<0.000000e+00> : vector<16x8xf32>
    %80 = tpu.matmul %79, %78, %cst_33 {dimension_numbers = #tpu.dot_dimension_numbers<[1], [0], [0], [1], [0, 0, 1, 1], [], []>} : vector<16x64xbf16>, vector<64x8xbf16>, vector<16x8xf32> -> vector<16x8xf32>
    %c6 = arith.constant 6 : index
    %c0_34 = arith.constant 0 : index
    %81 = vector.load %arg3[%c6, %c0_34] : memref<16x128xf32, #tpu.memory_space<vmem>>, vector<1x8xf32>
    %82 = vector.broadcast %81 : vector<1x8xf32> to vector<16x8xf32>
    %83 = arith.addf %80, %82 : vector<16x8xf32>
    %84 = vector.extract_strided_slice %83 {offsets = [0, 0], sizes = [16, 4], strides = [1, 1]} : vector<16x8xf32> to vector<16x4xf32>
    %85 = vector.extract_strided_slice %83 {offsets = [0, 4], sizes = [16, 4], strides = [1, 1]} : vector<16x8xf32> to vector<16x4xf32>
    %86 = arith.subf %1, %85 : vector<16x4xf32>
    %cst_35 = arith.constant 0.000000e+00 : f32
    %87 = vector.broadcast %cst_35 : f32 to vector<16x4xf32>
    %88 = arith.subf %87, %84 : vector<16x4xf32>
    %89 = math.exp %88 : vector<16x4xf32>
    %90 = arith.mulf %86, %89 : vector<16x4xf32>
    %91 = arith.select %55, %1, %90 : vector<16x4xi1>, vector<16x4xf32>
    %cst_36 = arith.constant 0.000000e+00 : f32
    %92 = vector.broadcast %cst_36 : f32 to vector<16x4xf32>
    %93 = arith.select %55, %92, %84 : vector<16x4xi1>, vector<16x4xf32>
    %94 = arith.subf %53, %93 : vector<16x4xf32>
    %cst_37 = arith.constant dense<0.000000e+00> : vector<4xf32>
    %95 = vector.multi_reduction <add>, %91, %cst_37 [0] : vector<16x4xf32> to vector<4xf32>
    %96 = vector.shape_cast %95 : vector<4xf32> to vector<1x4xf32>
    %cst_38 = arith.constant 1.600000e+01 : f32
    %97 = vector.broadcast %cst_38 : f32 to vector<1x4xf32>
    %98 = arith.divf %96, %97 : vector<1x4xf32>
    %99 = vector.broadcast %98 : vector<1x4xf32> to vector<16x4xf32>
    %100 = arith.subf %91, %99 : vector<16x4xf32>
    %101 = arith.mulf %100, %100 : vector<16x4xf32>
    %cst_39 = arith.constant dense<0.000000e+00> : vector<4xf32>
    %102 = vector.multi_reduction <add>, %101, %cst_39 [0] : vector<16x4xf32> to vector<4xf32>
    %103 = vector.shape_cast %102 : vector<4xf32> to vector<1x4xf32>
    %cst_40 = arith.constant 1.600000e+01 : f32
    %104 = vector.broadcast %cst_40 : f32 to vector<1x4xf32>
    %105 = arith.divf %103, %104 : vector<1x4xf32>
    %cst_41 = arith.constant 1.06666672 : f32
    %106 = vector.broadcast %cst_41 : f32 to vector<1x4xf32>
    %107 = arith.mulf %105, %106 : vector<1x4xf32>
    %c7 = arith.constant 7 : index
    %c0_42 = arith.constant 0 : index
    %108 = vector.load %arg3[%c7, %c0_42] : memref<16x128xf32, #tpu.memory_space<vmem>>, vector<1x4xf32>
    %cst_43 = arith.constant 9.99999974E-6 : f32
    %109 = vector.broadcast %cst_43 : f32 to vector<1x4xf32>
    %110 = arith.addf %107, %109 : vector<1x4xf32>
    %111 = math.rsqrt %110 : vector<1x4xf32>
    %112 = vector.broadcast %111 : vector<1x4xf32> to vector<16x4xf32>
    %113 = arith.mulf %100, %112 : vector<16x4xf32>
    %114 = vector.broadcast %108 : vector<1x4xf32> to vector<16x4xf32>
    %115 = arith.mulf %114, %113 : vector<16x4xf32>
    %c9 = arith.constant 9 : index
    %c0_44 = arith.constant 0 : index
    %116 = vector.load %arg3[%c9, %c0_44] : memref<16x128xf32, #tpu.memory_space<vmem>>, vector<1x4xf32>
    %117 = vector.broadcast %116 : vector<1x4xf32> to vector<16x4xf32>
    %118 = arith.addf %115, %117 : vector<16x4xf32>
    %c8 = arith.constant 8 : index
    %c0_45 = arith.constant 0 : index
    %119 = vector.load %arg3[%c8, %c0_45] : memref<16x128xf32, #tpu.memory_space<vmem>>, vector<1x4xf32>
    %cst_46 = arith.constant 9.99999974E-6 : f32
    %120 = vector.broadcast %cst_46 : f32 to vector<1x4xf32>
    %121 = arith.addf %107, %120 : vector<1x4xf32>
    %122 = math.log %121 : vector<1x4xf32>
    %cst_47 = arith.constant 5.000000e-01 : f32
    %123 = vector.broadcast %cst_47 : f32 to vector<1x4xf32>
    %124 = arith.mulf %123, %122 : vector<1x4xf32>
    %125 = arith.subf %119, %124 : vector<1x4xf32>
    %126 = vector.broadcast %125 : vector<1x4xf32> to vector<16x4xf32>
    %127 = arith.addf %94, %126 : vector<16x4xf32>
    %c0_i32 = arith.constant 0 : i32
    %128 = vector.broadcast %c0_i32 : i32 to vector<16x4xi32>
    %129 = arith.cmpi eq, %52, %128 : vector<16x4xi32>
    %130 = vector.extract_strided_slice %46 {offsets = [0, 64], sizes = [16, 64], strides = [1, 1]} : vector<16x128xf32> to vector<16x64xf32>
    %c176 = arith.constant 176 : index
    %c0_48 = arith.constant 0 : index
    %131 = vector.load %arg2[%c176, %c0_48] : memref<336x128xbf16, #tpu.memory_space<vmem>>, vector<4x64xbf16>
    %132 = arith.truncf %118 : vector<16x4xf32> to vector<16x4xbf16>
    %cst_49 = arith.constant dense<0.000000e+00> : vector<16x64xf32>
    %133 = tpu.matmul %132, %131, %cst_49 {dimension_numbers = #tpu.dot_dimension_numbers<[1], [0], [0], [1], [0, 0, 1, 1], [], []>} : vector<16x4xbf16>, vector<4x64xbf16>, vector<16x64xf32> -> vector<16x64xf32>
    %134 = arith.addf %130, %133 : vector<16x64xf32>
    %c10 = arith.constant 10 : index
    %c0_50 = arith.constant 0 : index
    %135 = vector.load %arg3[%c10, %c0_50] : memref<16x128xf32, #tpu.memory_space<vmem>>, vector<1x64xf32>
    %136 = vector.broadcast %135 : vector<1x64xf32> to vector<16x64xf32>
    %137 = arith.addf %134, %136 : vector<16x64xf32>
    %138 = math.tanh %137 : vector<16x64xf32>
    %cst_51 = arith.constant 0.000000e+00 : f32
    %139 = vector.broadcast %cst_51 : f32 to vector<16x64xf32>
    %140 = arith.maximumf %137, %139 : vector<16x64xf32>
    %141 = arith.select %49, %138, %140 : vector<16x64xi1>, vector<16x64xf32>
    %c192 = arith.constant 192 : index
    %c0_52 = arith.constant 0 : index
    %142 = vector.load %arg2[%c192, %c0_52] : memref<336x128xbf16, #tpu.memory_space<vmem>>, vector<64x64xbf16>
    %143 = arith.truncf %141 : vector<16x64xf32> to vector<16x64xbf16>
    %cst_53 = arith.constant dense<0.000000e+00> : vector<16x64xf32>
    %144 = tpu.matmul %143, %142, %cst_53 {dimension_numbers = #tpu.dot_dimension_numbers<[1], [0], [0], [1], [0, 0, 1, 1], [], []>} : vector<16x64xbf16>, vector<64x64xbf16>, vector<16x64xf32> -> vector<16x64xf32>
    %c11 = arith.constant 11 : index
    %c0_54 = arith.constant 0 : index
    %145 = vector.load %arg3[%c11, %c0_54] : memref<16x128xf32, #tpu.memory_space<vmem>>, vector<1x64xf32>
    %146 = vector.broadcast %145 : vector<1x64xf32> to vector<16x64xf32>
    %147 = arith.addf %144, %146 : vector<16x64xf32>
    %148 = math.tanh %147 : vector<16x64xf32>
    %cst_55 = arith.constant 0.000000e+00 : f32
    %149 = vector.broadcast %cst_55 : f32 to vector<16x64xf32>
    %150 = arith.maximumf %147, %149 : vector<16x64xf32>
    %151 = arith.select %49, %148, %150 : vector<16x64xi1>, vector<16x64xf32>
    %c256 = arith.constant 256 : index
    %c0_56 = arith.constant 0 : index
    %152 = vector.load %arg2[%c256, %c0_56] : memref<336x128xbf16, #tpu.memory_space<vmem>>, vector<64x8xbf16>
    %153 = arith.truncf %151 : vector<16x64xf32> to vector<16x64xbf16>
    %cst_57 = arith.constant dense<0.000000e+00> : vector<16x8xf32>
    %154 = tpu.matmul %153, %152, %cst_57 {dimension_numbers = #tpu.dot_dimension_numbers<[1], [0], [0], [1], [0, 0, 1, 1], [], []>} : vector<16x64xbf16>, vector<64x8xbf16>, vector<16x8xf32> -> vector<16x8xf32>
    %c12 = arith.constant 12 : index
    %c0_58 = arith.constant 0 : index
    %155 = vector.load %arg3[%c12, %c0_58] : memref<16x128xf32, #tpu.memory_space<vmem>>, vector<1x8xf32>
    %156 = vector.broadcast %155 : vector<1x8xf32> to vector<16x8xf32>
    %157 = arith.addf %154, %156 : vector<16x8xf32>
    %158 = vector.extract_strided_slice %157 {offsets = [0, 0], sizes = [16, 4], strides = [1, 1]} : vector<16x8xf32> to vector<16x4xf32>
    %159 = vector.extract_strided_slice %157 {offsets = [0, 4], sizes = [16, 4], strides = [1, 1]} : vector<16x8xf32> to vector<16x4xf32>
    %160 = arith.subf %118, %159 : vector<16x4xf32>
    %cst_59 = arith.constant 0.000000e+00 : f32
    %161 = vector.broadcast %cst_59 : f32 to vector<16x4xf32>
    %162 = arith.subf %161, %158 : vector<16x4xf32>
    %163 = math.exp %162 : vector<16x4xf32>
    %164 = arith.mulf %160, %163 : vector<16x4xf32>
    %165 = arith.select %129, %118, %164 : vector<16x4xi1>, vector<16x4xf32>
    %cst_60 = arith.constant 0.000000e+00 : f32
    %166 = vector.broadcast %cst_60 : f32 to vector<16x4xf32>
    %167 = arith.select %129, %166, %158 : vector<16x4xi1>, vector<16x4xf32>
    %168 = arith.subf %127, %167 : vector<16x4xf32>
    %cst_61 = arith.constant dense<0.000000e+00> : vector<4xf32>
    %169 = vector.multi_reduction <add>, %165, %cst_61 [0] : vector<16x4xf32> to vector<4xf32>
    %170 = vector.shape_cast %169 : vector<4xf32> to vector<1x4xf32>
    %cst_62 = arith.constant 1.600000e+01 : f32
    %171 = vector.broadcast %cst_62 : f32 to vector<1x4xf32>
    %172 = arith.divf %170, %171 : vector<1x4xf32>
    %173 = vector.broadcast %172 : vector<1x4xf32> to vector<16x4xf32>
    %174 = arith.subf %165, %173 : vector<16x4xf32>
    %175 = arith.mulf %174, %174 : vector<16x4xf32>
    %cst_63 = arith.constant dense<0.000000e+00> : vector<4xf32>
    %176 = vector.multi_reduction <add>, %175, %cst_63 [0] : vector<16x4xf32> to vector<4xf32>
    %177 = vector.shape_cast %176 : vector<4xf32> to vector<1x4xf32>
    %cst_64 = arith.constant 1.600000e+01 : f32
    %178 = vector.broadcast %cst_64 : f32 to vector<1x4xf32>
    %179 = arith.divf %177, %178 : vector<1x4xf32>
    %cst_65 = arith.constant 1.06666672 : f32
    %180 = vector.broadcast %cst_65 : f32 to vector<1x4xf32>
    %181 = arith.mulf %179, %180 : vector<1x4xf32>
    %c13 = arith.constant 13 : index
    %c0_66 = arith.constant 0 : index
    %182 = vector.load %arg3[%c13, %c0_66] : memref<16x128xf32, #tpu.memory_space<vmem>>, vector<1x4xf32>
    %cst_67 = arith.constant 9.99999974E-6 : f32
    %183 = vector.broadcast %cst_67 : f32 to vector<1x4xf32>
    %184 = arith.addf %181, %183 : vector<1x4xf32>
    %185 = math.rsqrt %184 : vector<1x4xf32>
    %186 = vector.broadcast %185 : vector<1x4xf32> to vector<16x4xf32>
    %187 = arith.mulf %174, %186 : vector<16x4xf32>
    %188 = vector.broadcast %182 : vector<1x4xf32> to vector<16x4xf32>
    %189 = arith.mulf %188, %187 : vector<16x4xf32>
    %c15 = arith.constant 15 : index
    %c0_68 = arith.constant 0 : index
    %190 = vector.load %arg3[%c15, %c0_68] : memref<16x128xf32, #tpu.memory_space<vmem>>, vector<1x4xf32>
    %191 = vector.broadcast %190 : vector<1x4xf32> to vector<16x4xf32>
    %192 = arith.addf %189, %191 : vector<16x4xf32>
    %c14 = arith.constant 14 : index
    %c0_69 = arith.constant 0 : index
    %193 = vector.load %arg3[%c14, %c0_69] : memref<16x128xf32, #tpu.memory_space<vmem>>, vector<1x4xf32>
    %cst_70 = arith.constant 9.99999974E-6 : f32
    %194 = vector.broadcast %cst_70 : f32 to vector<1x4xf32>
    %195 = arith.addf %181, %194 : vector<1x4xf32>
    %196 = math.log %195 : vector<1x4xf32>
    %cst_71 = arith.constant 5.000000e-01 : f32
    %197 = vector.broadcast %cst_71 : f32 to vector<1x4xf32>
    %198 = arith.mulf %197, %196 : vector<1x4xf32>
    %199 = arith.subf %193, %198 : vector<1x4xf32>
    %200 = vector.broadcast %199 : vector<1x4xf32> to vector<16x4xf32>
    %201 = arith.addf %168, %200 : vector<16x4xf32>
    %cst_72 = arith.constant 5.000000e-01 : f32
    %202 = vector.broadcast %cst_72 : f32 to vector<16x4xf32>
    %203 = arith.mulf %202, %192 : vector<16x4xf32>
    %204 = arith.mulf %203, %192 : vector<16x4xf32>
    %205 = arith.subf %204, %201 : vector<16x4xf32>
    %cst_73 = arith.constant dense<0.000000e+00> : vector<16xf32>
    %206 = vector.multi_reduction <add>, %205, %cst_73 [1] : vector<16x4xf32> to vector<16xf32>
    %207 = vector.shape_cast %206 : vector<16xf32> to vector<16x1xf32>
    %cst_74 = arith.constant dense<0.000000e+00> : vector<1xf32>
    %208 = vector.multi_reduction <add>, %207, %cst_74 [0] : vector<16x1xf32> to vector<1xf32>
    %209 = vector.shape_cast %208 : vector<1xf32> to vector<1x1xf32>
    %cst_75 = arith.constant 7.812500e-03 : f32
    %210 = vector.broadcast %cst_75 : f32 to vector<1x1xf32>
    %211 = arith.mulf %209, %210 : vector<1x1xf32>
    %c0_76 = arith.constant 0 : index
    %c0_77 = arith.constant 0 : index
    %212 = vector.load %arg4[%c0_76, %c0_77] : memref<1x1xf32, #tpu.memory_space<vmem>>, vector<1x1xf32>
    tpu.vector_store %arg4[%c0_76, %c0_77], %211 {strides = array<i32>} : memref<1x1xf32, #tpu.memory_space<vmem>>, vector<1x1xf32>,
    return
  }
}

</mosaic_0001>

<bundles_post_ra>
// kernel: rnn_cnf_forward.1
= control target key start
LH: loop header
LB: loop body
LE: loop exit
PB: predicated region body
PF: predicated region fallthrough
CT: control target
= control target key end

     0   :  { %9 = vsyncpa [#allocation3], 0  ;;  %s1500_s0 = inlined_call_operand.vmem [shape: f32[16,6], index: 0, kind: input, shape index: {}]   ;;  %s1501_s1 = inlined_call_operand.vmem [shape: f32[16,4], index: 1, kind: input, shape index: {}]   ;;  %s1502_s2 = inlined_call_operand.hbm [shape: bf16[336,128], index: 2, kind: input, shape index: {}]   ;;  %s1503_s3 = inlined_call_operand.vmem [shape: f32[16,128], index: 3, kind: input, shape index: {}]   ;;  %s1504_s4 = inlined_call_operand.hbm [shape: f32[1,1], index: 4, kind: output, shape index: {}]  }
   0x1   :  { %10 = vsyncpa [#allocation4], 0  ;;  %s1222_s15 = smov [#allocation2]  }
   0x2   :  { %s20_s16 = sshll.u32 %s1222_s15, 4  ;;  %s21_s16 = int_to_ptr.vmem [resolvable:$true] %s20_s16 }
   0x3   :  { %s1186_s17 = scalar_lea.vmem %s21_s16, 2688  ;;  %p1191_p1 = scmp.lt.s32.totalorder %s21_s16, %s21_s16 }
   0x4   :  { %p1187_p0 = scmp.ne.s32.totalorder %s21_s16, %s1186_s17  ;;  %p1192_p2 = scmp.lt.s32.totalorder %s1186_s17, %s1186_s17 }
   0x6   :  { %p1193_p3 = por %p1192_p2, %p1191_p1 }
   0x8   :  { %p1194_p4 = pnand %p1193_p3, %p1187_p0 }
   0xa   :  { %1197 = shalt.err (!%p1194_p4)
}
   0xb   :  { %s1223_s18 = smov 64   ;;  %s1224_s19 = smov 4  }
   0xc   :  { %26 = dma.hbm_to_vmem [thread:$0]  %s1502_s2, 2688, %s21_s16, [#allocation3], %s1223_s18, %s1223_s18, %s1224_s19  }
   0xd   :  { %1218 = dma.done.wait [#allocation3], 2688  }
   0xe   :  { %1219 = vsyncadd [#allocation3], 4294964608  ;;  %v1225_v0 = vmov 0.0   ;;  %vm1226_vm0 = vmmov 0   ;;  %vm48_vm1 = vcmask 1042432   ;;  %v33_v2 = vld [vmem:[%s1500_s0] sm:$0xff] }
   0xf   :  { %1028 = vmatprep.subr.bf16.mxu0 %v1225_v0  ;;  %1030 = vmatprep.mubr.msk.bf16.mxu0 %vm1226_vm0, %v1225_v0  ;;  %v37_v1 = vld [vmem:[#allocation2] sm:$0x7]  ;;  %v34_v3 = vld [vmem:[%s1500_s0 + $0x8] sm:$0xff]  ;;  %vm44_vm2 = vcmask 48128   ;;  %vm93_vm3 = vcmask 130048   ;;  %vm269_vm6 = vcmask 1041408  }
  0x10   :  { %1034 = vmatprep.subr.bf16.mxu1 %v1225_v0  ;;  %1036 = vmatprep.mubr.msk.bf16.mxu1 %vm1226_vm0, %v1225_v0  ;;  %v50_v4 = vsel %vm48_vm1, %v37_v1, 0  ;;  %v38_v5 = vpack.c.bf16 %v34_v3, %v33_v2  ;;  %v1123_v6 = vld [vmem:[#allocation2 + $0x8] sm:$0xff]   ;;  %v956_v7 = vld [vmem:[%s1503_s3] ss:$0 sm:$0xff]  ;;  %v958_v40 = vld [vmem:[%s1503_s3 + $0x1] ss:$0 sm:$0xff] }
  0x11   :  { %1029 = vmatpush3.bf16.msra.mxu0 %v50_v4  ;;  %1035 = vmatpush3.bf16.msra.mxu1 %v1123_v6  ;;  %v959_v43 = vld [vmem:[%s1503_s3 + $0x2] ss:$0 sm:$0xff]  ;;  %v263_v59 = vld [vmem:[#allocation2 + $0x10] sm:$0x3]  ;;  %v1300_v62 = vld [vmem:[%s1501_s1 + $0x8] sm:$0xff]  ;;  %vm213_vm7 = vcmask 1043456  }
  0x12   :  { %1040 = vmatprep.subr.bf16.mxu0 %v1225_v0  ;;  %1046 = vmatprep.subr.bf16.mxu1 %v1225_v0  ;;  %v271_v60 = vsel %vm269_vm6, %v263_v59, 0  ;;  %v1295_v61 = vld [vmem:[%s1501_s1] sm:$0xff]  ;;  %vm265_vm8 = vcmask 31744   ;;  %vm209_vm9 = vcmask 64512   ;;  %vm367_vm11 = vcmask 523264   ;;  %s1227_s15 = smov 124  }
  0x13   :  { %v207_v63 = vld [vmem:[#allocation2 + $0xa0] sm:$0xf]  ;;  %v264_v1 = vpack.c.bf16 %v1300_v62, %v1295_v61  ;;  %vm939_vm14 = vcmask 0  }
  0x14   :  { %1031 = vmatmul.mubr.msk.bf16.vlgmr.msra.gmra.mxu0 %vm44_vm2, %v38_v5  ;;  %v215_v2 = vsel %vm213_vm7, %v207_v63, 0  ;;  %v962_v4 = vld [vmem:[%s1503_s3 + $0x3] ss:$0 sm:$0xff] }
  0x15   :  { %1042 = vmatprep.mubr.msk.bf16.mxu0 %vm1226_vm0, %v1225_v0  ;;  %1041 = vmatpush3.bf16.msra.mxu0 %v215_v2 }
  0x16   :  { %1052 = vmatprep.subr.bf16.mxu0 %v1225_v0 }
  0xd4   :  { %v86_v8 = vpop.f32.mrf.mxu0 }
  0xd5   :  { %v87_v10 = vadd.f32 %v956_v7, %v86_v8 }
  0xd6   :  { %v1032_v9 = vpop.f32.mrf.mxu0 }
  0xd7   :  { %v94_v14 = vsel %vm93_vm3, %v87_v10, 0.0 }
  0xd8   :  { %v89_v11 = vpop.f32.mrf.mxu0 }
  0xd9   :  { %v90_v12 = vadd.f32 %v956_v7, %v89_v11 }
  0xda   :  { %v1033_v13 = vpop.f32.mrf.mxu0 }
  0xdb   :  { %v95_v15 = vsel %vm93_vm3, %v90_v12, 0.0 }
  0xdc   :  { %v96_v16 = vadd.f32 %v95_v15, %v94_v14  ;;  %v1124_v15 = vld [vmem:[#allocation2 + $0x30] sm:$0xff]  }
  0xde   :  { %v97_v17 = vrot.slane %v96_v16, 4 }
  0xe0   :  { %v98_v18 = vadd.f32 %v97_v17, %v96_v16  ;;  %v1125_v16 = vld [vmem:[#allocation2 + $0x28] sm:$0xff]   ;;  %v1126_v17 = vld [vmem:[#allocation2 + $0x20] sm:$0xff]  }
  0xe2   :  { %v99_v19 = vrot.slane %v98_v18, 2 }
  0xe4   :  { %v100_v20 = vadd.f32 %v99_v19, %v98_v18  ;;  %v1127_v18 = vld [vmem:[#allocation2 + $0x18] sm:$0xff]  }
  0xe6   :  { %v101_v21 = vrot.slane %v100_v20, 1 }
  0xe8   :  { %v102_v22 = vadd.f32 %v101_v21, %v100_v20  ;;  %v967_v20 = vld [vmem:[%s1503_s3 + $0x4] ss:$0 sm:$0xff] }
  0xea   :  { %v104_v23 = vmul.f32 0.0625, %v102_v22 }
  0xec   :  { %v105_v24 = vsub.f32 %v87_v10, %v104_v23  ;;  %v106_v25 = vsub.f32 %v90_v12, %v104_v23 }
  0xee   :  { %v107_v26 = vmul.f32 %v105_v24, %v105_v24  ;;  %v108_v27 = vmul.f32 %v106_v25, %v106_v25 }
  0xf0   :  { %v109_v28 = vsel %vm93_vm3, %v107_v26, 0.0  ;;  %v110_v29 = vsel %vm93_vm3, %v108_v27, 0.0 }
  0xf1   :  { %v111_v30 = vadd.f32 %v110_v29, %v109_v28  ;;  %v258_v28 = vlaneseq }
  0xf3   :  { %v112_v31 = vrot.slane %v111_v30, 4  ;;  %v1328_v29 = vand.u32 127, %v258_v28 }
  0xf5   :  { %v113_v32 = vadd.f32 %v112_v31, %v111_v30  ;;  %vm260_vm10 = vcmp.lt.s32.totalorder %v1328_v29, 32 }
  0xf7   :  { %v114_v33 = vrot.slane %v113_v32, 2 }
  0xf9   :  { %v115_v34 = vadd.f32 %v114_v33, %v113_v32 }
  0xfb   :  { %v116_v35 = vrot.slane %v115_v34, 1 }
  0xfd   :  { %v117_v36 = vadd.f32 %v116_v35, %v115_v34 }
  0xff   :  { %v118_v37 = vmul.f32 0.0625, %v117_v36 }
 0x101   :  { %v120_v38 = vadd.f32 1e-05, %v118_v37  ;;  %v1128_v37 = vld [vmem:[#allocation2 + $0x50] sm:$0xff]  }
 0x103   :  { %1140 = vrsqrt.f32 %v120_v38  ;;  %v1129_v38 = vld [vmem:[#allocation2 + $0x48] sm:$0xff]  }
 0x110   :  { %v1141_v39 = vpop.eup %1140 }
 0x111   :  { %v122_v41 = vmul.f32 %v1141_v39, %v105_v24  ;;  %v123_v42 = vmul.f32 %v1141_v39, %v106_v25  ;;  %v1130_v39 = vld [vmem:[#allocation2 + $0x40] sm:$0xff]  }
 0x113   :  { %v128_v44 = vmul.f32 %v958_v40, %v122_v41  ;;  %v129_v45 = vmul.f32 %v958_v40, %v123_v42  ;;  %v1131_v40 = vld [vmem:[#allocation2 + $0x38] sm:$0xff]   ;;  %v968_v41 = vld [vmem:[%s1503_s3 + $0x5] ss:$0 sm:$0xff] }
 0x115   :  { %v135_v46 = vadd.f32 %v959_v43, %v128_v44  ;;  %v136_v47 = vadd.f32 %v959_v43, %v129_v45 }
 0x117   :  { %v139_v48 = vmin.f32 %v135_v46, 0.0  ;;  %v140_v49 = vmin.f32 %v136_v47, 0.0  ;;  %vm137_vm4 = vcmp.gt.f32.partialorder %v135_v46, 0.0  ;;  %vm138_vm5 = vcmp.gt.f32.partialorder %v136_v47, 0.0 }
 0x119   :  { %v141_v50 = vmul.f32 1.442695, %v139_v48  ;;  %v143_v51 = vmul.f32 1.442695, %v140_v49 }
 0x11b   :  { %1142 = vpow2.f32 %v141_v50 }
 0x11c   :  { %1144 = vpow2.f32 %v143_v51 }
 0x128   :  { %v1143_v52 = vpop.eup %1142 }
 0x129   :  { %v1145_v53 = vpop.eup %1144  ;;  %v960_v54 = vadd.f32 -1.0, %v1143_v52 }
 0x12a   :  { %v961_v55 = vadd.f32 -1.0, %v1145_v53 }
 0x12b   :  { %v147_v56 = vsel %vm137_vm4, %v135_v46, %v960_v54 }
 0x12c   :  { %v148_v57 = vsel %vm138_vm5, %v136_v47, %v961_v55  ;;  %v974_v55 = vld [vmem:[%s1503_s3 + $0x6] ss:$0 sm:$0xff] }
 0x12d   :  { %v151_v58 = vpack.c.bf16 %v148_v57, %v147_v56 }
 0x12f   :  { %1037 = vmatmul.mubr.msk.bf16.vlgmr.msra.gmra.mxu1 %vm93_vm3, %v151_v58 }
 0x130   :  { %1048 = vmatprep.mubr.msk.bf16.mxu1 %vm1226_vm0, %v1225_v0  ;;  %1047 = vmatpush3.bf16.msra.mxu1 %v271_v60 }
 0x131   :  { %1064 = vmatprep.subr.bf16.mxu1 %v1225_v0 }
 0x137   :  { %1049 = vmatmul.mubr.msk.bf16.vlgmr.msra.gmra.mxu1 %vm265_vm8, %v264_v1  ;;  %v579_v1 = vld [vmem:[#allocation2 + $0x58] sm:$0x3] }
 0x138   :  { %1072 = vmatprep.mubr.msk.bf16.mxu1 %vm1226_vm0, %v1225_v0  ;;  %1065 = vmatpush3.bf16.msra.mxu1 %v1128_v37  ;;  %v585_v2 = vsel %vm269_vm6, %v579_v1, 0 }
 0x139   :  { %1066 = vmatprep.subr.bf16.mxu1 %v1225_v0 }
 0x13c   :  { %1067 = vmatpush3.bf16.msra.mxu1 %v1129_v38 }
 0x13d   :  { %1068 = vmatprep.subr.bf16.mxu1 %v1225_v0 }
 0x140   :  { %1069 = vmatpush3.bf16.msra.mxu1 %v1130_v39 }
 0x141   :  { %1070 = vmatprep.subr.bf16.mxu1 %v1225_v0 }
 0x144   :  { %1071 = vmatpush3.bf16.msra.mxu1 %v1131_v40 }
 0x145   :  { %1082 = vmatprep.subr.bf16.mxu1 %v1225_v0 }
 0x1ef   :  { %v200_v3 = vpop.f32.mrf.mxu1 }
 0x1f0   :  { %v201_v7 = vadd.f32 %v962_v4, %v200_v3 }
 0x1f1   :  { %v1038_v5 = vpop.f32.mrf.mxu1 }
 0x1f3   :  { %v203_v6 = vpop.f32.mrf.mxu1 }
 0x1f4   :  { %v204_v8 = vadd.f32 %v962_v4, %v203_v6 }
 0x1f5   :  { %v1039_v9 = vpop.f32.mrf.mxu1 }
 0x1f6   :  { %v208_v10 = vpack.c.bf16 %v204_v8, %v201_v7 }
 0x1f7   :  { %v307_v11 = vpop.f32.mrf.mxu1 }
 0x1f8   :  { %1043 = vmatmul.mubr.msk.bf16.vlgmr.msra.gmra.mxu0 %vm209_vm9, %v208_v10  ;;  %v261_v10 = vand.u32 1, %v1328_v29 }
 0x1f9   :  { %1060 = vmatprep.mubr.msk.bf16.mxu0 %vm1226_vm0, %v1225_v0  ;;  %v1050_v12 = vpop.f32.mrf.mxu1  ;;  %1053 = vmatpush3.bf16.msra.mxu0 %v1124_v15 }
 0x1fa   :  { %1054 = vmatprep.subr.bf16.mxu0 %v1225_v0  ;;  %vm1372_vm12 = vcmp.eq.s32.totalorder %v261_v10, 1  ;;  %vm1454_vm13 = vcmp.eq.s32.totalorder %v261_v10, 0 }
 0x1fb   :  { %v310_v13 = vpop.f32.mrf.mxu1 }
 0x1fd   :  { %v1051_v14 = vpop.f32.mrf.mxu1  ;;  %1055 = vmatpush3.bf16.msra.mxu0 %v1125_v16 }
 0x1fe   :  { %1056 = vmatprep.subr.bf16.mxu0 %v1225_v0 }
 0x201   :  { %1057 = vmatpush3.bf16.msra.mxu0 %v1126_v17 }
 0x202   :  { %1058 = vmatprep.subr.bf16.mxu0 %v1225_v0 }
 0x205   :  { %1059 = vmatpush3.bf16.msra.mxu0 %v1127_v18 }
 0x206   :  { %1076 = vmatprep.subr.bf16.mxu0 %v1225_v0 }
 0x2b8   :  { %v1318_v19 = vpop.f32.mrf.mxu0 }
 0x2b9   :  { %v314_v21 = vadd.f32 %v307_v11, %v1318_v19 }
 0x2ba   :  { %v1044_v22 = vpop.f32.mrf.mxu0 }
 0x2bb   :  { %v321_v23 = vadd.f32 %v967_v20, %v314_v21 }
 0x2bc   :  { %v1324_v24 = vpop.f32.mrf.mxu0 }
 0x2bd   :  { %v315_v25 = vadd.f32 %v310_v13, %v1324_v24  ;;  %1146 = vtanh.f32 %v321_v23  ;;  %v325_v31 = vmax.f32 %v321_v23, 0.0 }
 0x2be   :  { %v1045_v26 = vpop.f32.mrf.mxu0 }
 0x2bf   :  { %v322_v27 = vadd.f32 %v967_v20, %v315_v25 }
 0x2c1   :  { %1148 = vtanh.f32 %v322_v27  ;;  %v326_v32 = vmax.f32 %v322_v27, 0.0 }
 0x2ca   :  { %v1147_v30 = vpop.eup %1146 }
 0x2cb   :  { %v327_v34 = vsel %vm260_vm10, %v1147_v30, %v325_v31 }
 0x2ce   :  { %v1149_v33 = vpop.eup %1148 }
 0x2cf   :  { %v328_v35 = vsel %vm260_vm10, %v1149_v33, %v326_v32 }
 0x2d0   :  { %v337_v36 = vpack.c.bf16 %v328_v35, %v327_v34 }
 0x2d2   :  { %1061 = vmatmul.mubr.msk.bf16.vlgmr.msra.gmra.mxu0 %vm367_vm11, %v337_v36 }
 0x2d3   :  { %1078 = vmatprep.mubr.msk.bf16.mxu0 %vm1226_vm0, %v1225_v0  ;;  %1077 = vmatpush3.bf16.msra.mxu0 %v585_v2 }
 0x2d4   :  { %1094 = vmatprep.subr.bf16.mxu0 %v1225_v0 }
 0x392   :  { %v405_v42 = vpop.f32.mrf.mxu0 }
 0x393   :  { %v406_v43 = vadd.f32 %v968_v41, %v405_v42 }
 0x394   :  { %v1062_v44 = vpop.f32.mrf.mxu0 }
 0x395   :  { %1150 = vtanh.f32 %v406_v43  ;;  %v414_v49 = vmax.f32 %v406_v43, 0.0 }
 0x396   :  { %v408_v45 = vpop.f32.mrf.mxu0 }
 0x397   :  { %v409_v46 = vadd.f32 %v968_v41, %v408_v45 }
 0x398   :  { %v1063_v47 = vpop.f32.mrf.mxu0 }
 0x399   :  { %1152 = vtanh.f32 %v409_v46  ;;  %v415_v50 = vmax.f32 %v409_v46, 0.0 }
 0x3a2   :  { %v1151_v48 = vpop.eup %1150 }
 0x3a3   :  { %v416_v52 = vsel %vm260_vm10, %v1151_v48, %v414_v49  ;;  %v980_v48 = vld [vmem:[%s1503_s3 + $0x7] ss:$0 sm:$0xff]  ;;  %v1390_v49 = vshrl.u32 %v258_v28, 7 }
 0x3a6   :  { %v1153_v51 = vpop.eup %1152 }
 0x3a7   :  { %v417_v53 = vsel %vm260_vm10, %v1153_v51, %v415_v50 }
 0x3a8   :  { %v426_v54 = vpack.c.bf16 %v417_v53, %v416_v52  ;;  %v981_v53 = vld [vmem:[%s1503_s3 + $0x9] ss:$0 sm:$0xff] }
 0x3aa   :  { %1073 = vmatmul.mubr.msk.bf16.vlgmr.msra.gmra.mxu1 %vm367_vm11, %v426_v54 }
 0x3ab   :  { %1090 = vmatprep.mubr.msk.bf16.mxu1 %vm1226_vm0, %v1225_v0 }
 0x46a   :  { %v493_v56 = vpop.f32.mrf.mxu1 }
 0x46b   :  { %v1355_v57 = vadd.f32 %v974_v55, %v493_v56 }
 0x46c   :  { %v1074_v58 = vpop.f32.mrf.mxu1 }
 0x46d   :  { %502 = vrot.lane.b32.xlu0 %v1355_v57, %s1227_s15  ;;  %v510_v3 = vsub.f32 0.0, %v1355_v57  ;;  %v567_v58 = vld [vmem:[%s1503_s3 + $0x8] sm:$0x1]  ;;  %v520_v28 = vsel %vm1372_vm12, 0.0, %v1355_v57 }
 0x46e   :  { %v496_v59 = vpop.f32.mrf.mxu1 }
 0x46f   :  { %v1359_v60 = vadd.f32 %v974_v55, %v496_v59  ;;  %v512_v4 = vmul.f32 1.442695, %v510_v3 }
 0x470   :  { %v1075_v63 = vpop.f32.mrf.mxu1 }
 0x471   :  { %504 = vrot.lane.b32.xlu0 %v1359_v60, %s1227_s15  ;;  %v511_v5 = vsub.f32 0.0, %v1359_v60  ;;  %1154 = vpow2.f32 %v512_v4  ;;  %v574_v63 = vsub.s32 0, %v1390_v49  ;;  %v521_v1 = vsel %vm1372_vm12, 0.0, %v1359_v60 }
 0x473   :  { %v514_v6 = vmul.f32 1.442695, %v511_v5 }
 0x475   :  { %1156 = vpow2.f32 %v514_v6  ;;  %v522_v6 = vsub.f32 0.0, %v520_v28  ;;  %v990_v28 = vld [vmem:[%s1503_s3 + $0xc] ss:$0 sm:$0xff] }
 0x47e   :  { %v1155_v9 = vpop.eup %1154 }
 0x482   :  { %v1157_v14 = vpop.eup %1156 }
 0x4df   :  { %v503_v7 = vpop.permute.xlu0 %502 }
 0x4e0   :  { %v508_v8 = vsub.f32 %v1295_v61, %v503_v7  ;;  %v523_v7 = vsub.f32 0.0, %v521_v1 }
 0x4e2   :  { %v516_v11 = vmul.f32 %v1155_v9, %v508_v8  ;;  %v983_v9 = vld [vmem:[%s1503_s3 + $0xa] ss:$0 sm:$0xff] }
 0x4e3   :  { %v505_v12 = vpop.permute.xlu0 %504  ;;  %644 = vrot.lane.b32.xlu0 %v983_v9, %s1223_s18 }
 0x4e4   :  { %v509_v13 = vsub.f32 %v1300_v62, %v505_v12  ;;  %v518_v16 = vsel %vm1372_vm12, %v1295_v61, %v516_v11 }
 0x4e5   :  { %v524_v20 = vsel %vm265_vm8, %v518_v16, 0.0 }
 0x4e6   :  { %v517_v17 = vmul.f32 %v1157_v14, %v509_v13 }
 0x4e8   :  { %v519_v18 = vsel %vm1372_vm12, %v1300_v62, %v517_v17 }
 0x4e9   :  { %v525_v21 = vsel %vm265_vm8, %v519_v18, 0.0 }
 0x4ea   :  { %v526_v22 = vadd.f32 %v525_v21, %v524_v20  ;;  %v1133_v20 = vld [vmem:[#allocation2 + $0x70] sm:$0xff]  }
 0x4ec   :  { %v527_v23 = vrot.slane %v526_v22, 4 }
 0x4ee   :  { %v528_v25 = vadd.f32 %v527_v23, %v526_v22 }
 0x4f0   :  { %v529_v26 = vrot.slane %v528_v25, 2 }
 0x4f2   :  { %v530_v27 = vadd.f32 %v529_v26, %v528_v25  ;;  %v1134_v25 = vld [vmem:[#allocation2 + $0x68] sm:$0xff]  }
 0x4f4   :  { %v531_v30 = vrot.slane %v530_v27, 1 }
 0x4f6   :  { %v532_v31 = vadd.f32 %v531_v30, %v530_v27 }
 0x4f8   :  { %v533_v32 = vmul.f32 0.0625, %v532_v31  ;;  %v1135_v31 = vld [vmem:[#allocation2 + $0x60] sm:$0xff]  }
 0x4fa   :  { %v534_v33 = vsub.f32 %v518_v16, %v533_v32  ;;  %v535_v34 = vsub.f32 %v519_v18, %v533_v32  ;;  %v1132_v16 = vld [vmem:[#allocation2 + $0x78] sm:$0xff]  }
 0x4fb   :  { %1083 = vmatpush3.bf16.msra.mxu1 %v1132_v16 }
 0x4fc   :  { %v536_v61 = vmul.f32 %v534_v33, %v534_v33  ;;  %v537_v35 = vmul.f32 %v535_v34, %v535_v34  ;;  %1084 = vmatprep.subr.bf16.mxu1 %v1225_v0 }
 0x4fe   :  { %v538_v36 = vsel %vm265_vm8, %v536_v61, 0.0  ;;  %v539_v62 = vsel %vm265_vm8, %v537_v35, 0.0 }
 0x4ff   :  { %v540_v37 = vadd.f32 %v539_v62, %v538_v36  ;;  %1085 = vmatpush3.bf16.msra.mxu1 %v1133_v20 }
 0x500   :  { %1086 = vmatprep.subr.bf16.mxu1 %v1225_v0 }
 0x501   :  { %v541_v38 = vrot.slane %v540_v37, 4 }
 0x503   :  { %v542_v39 = vadd.f32 %v541_v38, %v540_v37  ;;  %1087 = vmatpush3.bf16.msra.mxu1 %v1134_v25 }
 0x504   :  { %1088 = vmatprep.subr.bf16.mxu1 %v1225_v0 }
 0x505   :  { %v543_v40 = vrot.slane %v542_v39, 2 }
 0x507   :  { %v544_v41 = vadd.f32 %v543_v40, %v542_v39  ;;  %1089 = vmatpush3.bf16.msra.mxu1 %v1135_v31 }
 0x509   :  { %v545_v42 = vrot.slane %v544_v41, 1 }
 0x50b   :  { %v546_v43 = vadd.f32 %v545_v42, %v544_v41  ;;  %v1136_v41 = vld [vmem:[#allocation2 + $0x98] sm:$0xff]   ;;  %v1137_v42 = vld [vmem:[#allocation2 + $0x90] sm:$0xff]  }
 0x50d   :  { %v547_v44 = vmul.f32 0.0625, %v546_v43  ;;  %v1138_v43 = vld [vmem:[#allocation2 + $0x88] sm:$0xff]  }
 0x50f   :  { %v548_v45 = vmul.f32 1.0666667, %v547_v44  ;;  %v1139_v44 = vld [vmem:[#allocation2 + $0x80] sm:$0xff]  }
 0x511   :  { %v550_v46 = vadd.f32 1e-05, %v548_v45  ;;  %v984_v45 = vld [vmem:[%s1503_s3 + $0xb] ss:$0 sm:$0xff] }
 0x513   :  { %1158 = vrsqrt.f32 %v550_v46 }
 0x514   :  { %1160 = vlog2.f32 %v550_v46 }
 0x520   :  { %v1159_v47 = vpop.eup %1158 }
 0x521   :  { %v1161_v50 = vpop.eup %1160  ;;  %v552_v51 = vmul.f32 %v1159_v47, %v534_v33  ;;  %v553_v52 = vmul.f32 %v1159_v47, %v535_v34 }
 0x522   :  { %v569_v54 = vmul.f32 0.6931472, %v1161_v50 }
 0x523   :  { %v558_v55 = vmul.f32 %v980_v48, %v552_v51  ;;  %v559_v56 = vmul.f32 %v980_v48, %v553_v52 }
 0x524   :  { %v570_v59 = vmul.f32 0.5, %v569_v54 }
 0x525   :  { %v1405_v2 = vadd.f32 %v981_v53, %v558_v55  ;;  %v1407_v3 = vadd.f32 %v981_v53, %v559_v56 }
 0x526   :  { %v571_v4 = vsub.f32 %v567_v58, %v570_v59 }
 0x527   :  { %v580_v5 = vpack.c.bf16 %v1407_v3, %v1405_v2 }
 0x528   :  { %v575_v8 = vrot.slane %v571_v4, %v574_v63 }
 0x529   :  { %1079 = vmatmul.mubr.msk.bf16.vlgmr.msra.gmra.mxu0 %vm265_vm8, %v580_v5 }
 0x52a   :  { %1102 = vmatprep.mubr.msk.bf16.mxu0 %vm1226_vm0, %v1225_v0  ;;  %v1416_v57 = vadd.f32 %v575_v8, %v522_v6  ;;  %v1418_v60 = vadd.f32 %v575_v8, %v523_v7  ;;  %1095 = vmatpush3.bf16.msra.mxu0 %v1136_v41 }
 0x52b   :  { %1096 = vmatprep.subr.bf16.mxu0 %v1225_v0 }
 0x52e   :  { %1097 = vmatpush3.bf16.msra.mxu0 %v1137_v42 }
 0x52f   :  { %1098 = vmatprep.subr.bf16.mxu0 %v1225_v0 }
 0x532   :  { %1099 = vmatpush3.bf16.msra.mxu0 %v1138_v43 }
 0x533   :  { %1100 = vmatprep.subr.bf16.mxu0 %v1225_v0 }
 0x536   :  { %1101 = vmatpush3.bf16.msra.mxu0 %v1139_v44 }
 0x555   :  { %v645_v18 = vpop.permute.xlu0 %644 }
 0x5e9   :  { %v621_v11 = vpop.f32.mrf.mxu0 }
 0x5ea   :  { %630 = vrot.lane.b32.xlu1 %v621_v11, %s1223_s18 }
 0x5eb   :  { %v1080_v12 = vpop.f32.mrf.mxu0 }
 0x5ed   :  { %v624_v13 = vpop.f32.mrf.mxu0 }
 0x5ee   :  { %632 = vrot.lane.b32.xlu1 %v624_v13, %s1223_s18 }
 0x5ef   :  { %v1081_v14 = vpop.f32.mrf.mxu0 }
 0x65c   :  { %v631_v15 = vpop.permute.xlu1 %630 }
 0x65d   :  { %v636_v17 = vadd.f32 %v631_v15, %v1318_v19 }
 0x65f   :  { %v647_v21 = vadd.f32 %v645_v18, %v636_v17 }
 0x660   :  { %v633_v22 = vpop.permute.xlu1 %632 }
 0x661   :  { %v637_v23 = vadd.f32 %v633_v22, %v1324_v24  ;;  %1162 = vtanh.f32 %v647_v21  ;;  %v651_v27 = vmax.f32 %v647_v21, 0.0 }
 0x663   :  { %v648_v26 = vadd.f32 %v645_v18, %v637_v23 }
 0x665   :  { %1164 = vtanh.f32 %v648_v26  ;;  %v652_v30 = vmax.f32 %v648_v26, 0.0 }
 0x667   :  { %v1118_v19 = vpack.i.bf16 %v652_v30, %v651_v27 }
 0x669   :  { %1119 = vrot.lane.b32.xlu0 %v1118_v19, %s1223_s18 }
 0x66e   :  { %v1163_v32 = vpop.eup %1162 }
 0x672   :  { %v1165_v33 = vpop.eup %1164 }
 0x673   :  { %v1113_v24 = vpack.i.bf16 %v1165_v33, %v1163_v32 }
 0x675   :  { %1114 = vrot.lane.b32.xlu1 %v1113_v24, %s1223_s18 }
 0x6db   :  { %v1120_v34 = vpop.permute.xlu0 %1119 }
 0x6dc   :  { %v1122_v35 = vunpack.i.h.bf16 %v1120_v34  ;;  %v1121_v36 = vunpack.i.l.bf16 %v1120_v34 }
 0x6e7   :  { %v1115_v61 = vpop.permute.xlu1 %1114 }
 0x6e8   :  { %v1117_v62 = vunpack.i.h.bf16 %v1115_v61  ;;  %v1116_v37 = vunpack.i.l.bf16 %v1115_v61 }
 0x6ea   :  { %v670_v38 = vsel %vm260_vm10, %v1117_v62, %v1122_v35  ;;  %v669_v39 = vsel %vm260_vm10, %v1116_v37, %v1121_v36 }
 0x6eb   :  { %v679_v40 = vpack.c.bf16 %v670_v38, %v669_v39 }
 0x6ed   :  { %1091 = vmatmul.mubr.msk.bf16.vlgmr.msra.gmra.mxu1 %vm367_vm11, %v679_v40 }
 0x7ad   :  { %v746_v46 = vpop.f32.mrf.mxu1 }
 0x7ae   :  { %v747_v47 = vadd.f32 %v984_v45, %v746_v46 }
 0x7af   :  { %v1092_v48 = vpop.f32.mrf.mxu1 }
 0x7b0   :  { %1166 = vtanh.f32 %v747_v47  ;;  %v755_v54 = vmax.f32 %v747_v47, 0.0 }
 0x7b1   :  { %v749_v50 = vpop.f32.mrf.mxu1 }
 0x7b2   :  { %v750_v51 = vadd.f32 %v984_v45, %v749_v50 }
 0x7b3   :  { %v1093_v52 = vpop.f32.mrf.mxu1 }
 0x7b4   :  { %1168 = vtanh.f32 %v750_v51  ;;  %v756_v55 = vmax.f32 %v750_v51, 0.0  ;;  %v996_v51 = vld [vmem:[%s1503_s3 + $0xd] ss:$0 sm:$0xff] }
 0x7bd   :  { %v1167_v53 = vpop.eup %1166 }
 0x7be   :  { %v757_v0 = vsel %vm260_vm10, %v1167_v53, %v755_v54 }
 0x7c1   :  { %v1169_v56 = vpop.eup %1168 }
 0x7c2   :  { %v758_v58 = vsel %vm260_vm10, %v1169_v56, %v756_v55  ;;  %v997_v55 = vld [vmem:[%s1503_s3 + $0xf] ss:$0 sm:$0xff] }
 0x7c3   :  { %v767_v59 = vpack.c.bf16 %v758_v58, %v757_v0  ;;  %v908_v58 = vld [vmem:[%s1503_s3 + $0xe] sm:$0x1]  ;;  %s1228_s3 = smov [#allocation5]  }
 0x7c4   :  { %s947_s6 = sshll.u32 %s1228_s3, 4  ;;  %s948_s6 = int_to_ptr.vmem [resolvable:$true] %s947_s6 }
 0x7c5   :  { %1103 = vmatmul.mubr.msk.bf16.vlgmr.msra.gmra.mxu0 %vm367_vm11, %v767_v59  ;;  %s1198_s7 = scalar_lea.vmem %s948_s6, 16  ;;  %s1202_s1 = scalar_lea.vmem %s948_s6, 32 }
 0x7c6   :  { %p1199_p5 = scmp.ne.s32.totalorder %s948_s6, %s1198_s7  ;;  %p1203_p6 = scmp.lt.s32.totalorder %s948_s6, %s948_s6 }
 0x7c7   :  { %p1204_p7 = scmp.lt.s32.totalorder %s1202_s1, %s1198_s7 }
 0x7c9   :  { %p1205_p8 = por %p1204_p7, %p1203_p6 }
 0x7cb   :  { %p1206_p9 = pnand %p1205_p8, %p1199_p5 }
 0x885   :  { %v834_v4 = vpop.f32.mrf.mxu0 }
 0x886   :  { %v835_v5 = vadd.f32 %v990_v28, %v834_v4 }
 0x887   :  { %v1104_v6 = vpop.f32.mrf.mxu0 }
 0x888   :  { %v861_v7 = vsel %vm1454_vm13, 0.0, %v835_v5  ;;  %843 = vrot.lane.b32.xlu1 %v835_v5, %s1227_s15  ;;  %v851_v13 = vsub.f32 0.0, %v835_v5 }
 0x889   :  { %v1462_v8 = vsub.f32 %v1416_v57, %v861_v7  ;;  %v837_v9 = vpop.f32.mrf.mxu0 }
 0x88a   :  { %v838_v11 = vadd.f32 %v990_v28, %v837_v9  ;;  %v853_v14 = vmul.f32 1.442695, %v851_v13 }
 0x88b   :  { %v1105_v12 = vpop.f32.mrf.mxu0 }
 0x88c   :  { %v862_v29 = vsel %vm1454_vm13, 0.0, %v838_v11  ;;  %845 = vrot.lane.b32.xlu0 %v838_v11, %s1227_s15  ;;  %v852_v15 = vsub.f32 0.0, %v838_v11  ;;  %1170 = vpow2.f32 %v853_v14 }
 0x88d   :  { %v1468_v10 = vsub.f32 %v1418_v60, %v862_v29 }
 0x88e   :  { %v855_v16 = vmul.f32 1.442695, %v852_v15 }
 0x890   :  { %1172 = vpow2.f32 %v855_v16 }
 0x899   :  { %v1171_v18 = vpop.eup %1170 }
 0x89d   :  { %v1173_v23 = vpop.eup %1172 }
 0x8fa   :  { %v844_v17 = vpop.permute.xlu1 %843 }
 0x8fb   :  { %v849_v57 = vsub.f32 %v1405_v2, %v844_v17 }
 0x8fd   :  { %v857_v20 = vmul.f32 %v1171_v18, %v849_v57 }
 0x8fe   :  { %v846_v21 = vpop.permute.xlu0 %845 }
 0x8ff   :  { %v850_v22 = vsub.f32 %v1407_v3, %v846_v21  ;;  %v859_v60 = vsel %vm1454_vm13, %v1405_v2, %v857_v20 }
 0x900   :  { %v865_v27 = vsel %vm265_vm8, %v859_v60, 0.0 }
 0x901   :  { %v858_v25 = vmul.f32 %v1173_v23, %v850_v22 }
 0x903   :  { %v860_v26 = vsel %vm1454_vm13, %v1407_v3, %v858_v25 }
 0x904   :  { %v866_v30 = vsel %vm265_vm8, %v860_v26, 0.0 }
 0x905   :  { %v867_v19 = vadd.f32 %v866_v30, %v865_v27 }
 0x907   :  { %v868_v31 = vrot.slane %v867_v19, 4 }
 0x909   :  { %v869_v32 = vadd.f32 %v868_v31, %v867_v19 }
 0x90b   :  { %v870_v33 = vrot.slane %v869_v32, 2 }
 0x90d   :  { %v871_v24 = vadd.f32 %v870_v33, %v869_v32 }
 0x90f   :  { %v872_v34 = vrot.slane %v871_v24, 1 }
 0x911   :  { %v873_v61 = vadd.f32 %v872_v34, %v871_v24 }
 0x913   :  { %v874_v35 = vmul.f32 0.0625, %v873_v61 }
 0x915   :  { %v875_v36 = vsub.f32 %v859_v60, %v874_v35  ;;  %v876_v62 = vsub.f32 %v860_v26, %v874_v35 }
 0x917   :  { %v877_v2 = vmul.f32 %v875_v36, %v875_v36  ;;  %v878_v37 = vmul.f32 %v876_v62, %v876_v62 }
 0x919   :  { %v879_v38 = vsel %vm265_vm8, %v877_v2, 0.0  ;;  %v880_v3 = vsel %vm265_vm8, %v878_v37, 0.0 }
 0x91a   :  { %v881_v39 = vadd.f32 %v880_v3, %v879_v38 }
 0x91c   :  { %v882_v40 = vrot.slane %v881_v39, 4 }
 0x91e   :  { %v883_v41 = vadd.f32 %v882_v40, %v881_v39 }
 0x920   :  { %v884_v42 = vrot.slane %v883_v41, 2 }
 0x922   :  { %v885_v43 = vadd.f32 %v884_v42, %v883_v41 }
 0x924   :  { %v886_v44 = vrot.slane %v885_v43, 1 }
 0x926   :  { %v887_v45 = vadd.f32 %v886_v44, %v885_v43 }
 0x928   :  { %v888_v46 = vmul.f32 0.0625, %v887_v45 }
 0x92a   :  { %v889_v47 = vmul.f32 1.0666667, %v888_v46 }
 0x92c   :  { %v891_v48 = vadd.f32 1e-05, %v889_v47 }
 0x92e   :  { %1174 = vrsqrt.f32 %v891_v48 }
 0x92f   :  { %1176 = vlog2.f32 %v891_v48 }
 0x93b   :  { %v1175_v50 = vpop.eup %1174 }
 0x93c   :  { %v1177_v52 = vpop.eup %1176  ;;  %v894_v53 = vmul.f32 %v1175_v50, %v876_v62  ;;  %v893_v54 = vmul.f32 %v1175_v50, %v875_v36 }
 0x93d   :  { %v910_v56 = vmul.f32 0.6931472, %v1177_v52 }
 0x93e   :  { %v900_v0 = vmul.f32 %v996_v51, %v894_v53  ;;  %v899_v59 = vmul.f32 %v996_v51, %v893_v54 }
 0x93f   :  { %v911_v28 = vmul.f32 0.5, %v910_v56 }
 0x940   :  { %v907_v1 = vadd.f32 %v997_v55, %v900_v0  ;;  %v906_v4 = vadd.f32 %v997_v55, %v899_v59 }
 0x941   :  { %v912_v5 = vsub.f32 %v908_v58, %v911_v28 }
 0x942   :  { %v920_v6 = vmul.f32 0.5, %v907_v1  ;;  %v919_v7 = vmul.f32 0.5, %v906_v4 }
 0x943   :  { %v916_v9 = vrot.slane %v912_v5, %v574_v63 }
 0x944   :  { %v922_v11 = vmul.f32 %v920_v6, %v907_v1  ;;  %v921_v12 = vmul.f32 %v919_v7, %v906_v4 }
 0x945   :  { %v918_v29 = vadd.f32 %v916_v9, %v1468_v10  ;;  %v917_v13 = vadd.f32 %v916_v9, %v1462_v8 }
 0x947   :  { %v924_v14 = vsub.f32 %v922_v11, %v918_v29  ;;  %v923_v15 = vsub.f32 %v921_v12, %v917_v13 }
 0x949   :  { %v928_v16 = vsel %vm265_vm8, %v924_v14, 0.0  ;;  %v925_v17 = vsel %vm265_vm8, %v923_v15, 0.0 }
 0x94a   :  { %929 = vadd.xlane.f32.xlu0 %v928_v16  ;;  %926 = vadd.xlane.f32.xlu1 %v925_v17 }
 0x9d3   :  { %v930_v57 = vpop.xlane.xlu0 %929  ;;  %v927_v18 = vpop.xlane.xlu1 %926 }
 0x9d4   :  { %v931_v20 = vadd.f32 %v930_v57, %v927_v18 }
 0x9d6   :  { %v932_v21 = vrot.slane %v931_v20, 4 }
 0x9d8   :  { %v933_v49 = vadd.f32 %v932_v21, %v931_v20 }
 0x9da   :  { %v934_v63 = vrot.slane %v933_v49, 2 }
 0x9dc   :  { %v935_v22 = vadd.f32 %v934_v63, %v933_v49 }
 0x9de   :  { %v936_v23 = vrot.slane %v935_v22, 1 }
 0x9e0   :  { %v937_v10 = vadd.f32 %v936_v23, %v935_v22 }
 0x9e2   :  { %v938_v8 = vmul.f32 0.0078125, %v937_v10 }
 0x9e4   :  { %940 = vst.msk [vmem:[#allocation5] sm:$0x1] %vm939_vm14, %v938_v8 }
 0x9e5   :  { %1209 = shalt.err (!%p1206_p9)
}
 0x9e6   :  { %950 = dma.vmem_to_hbm [thread:$0]  %s948_s6, 16, %s1504_s4, [#allocation4]  }
 0x9e7   :  { %1220 = dma.done.wait [#allocation4], 16  }
 0x9e8   :  { %1221 = vsyncadd [#allocation4], 4294967280 }
 0x9e9   :  { %954 = vsyncpa [#allocation3], 1 }
 0x9ea   :  { %955 = vsyncpa [#allocation4], 1 }

</bundles_post_ra>
